<compile_context>
chip_gen: v6e
topology: v6e:2x2x1
jax: 0.10.0
libtpu: 0.0.40
codegen_flags: <defaults>
</compile_context>

<pallas_src>
import numpy as np
import jax
import jax.numpy as jnp
from jax.experimental import pallas as pl
from jax.experimental.pallas import tpu as pltpu


# ----------------------------- MRF structure (static) -----------------------------
DOMAIN_SIZES = (2, 3, 2, 4, 3, 2)                       # 6 discrete random variables
CLIQUE_ROWS = ((0, 1), (1, 2, 3), (3, 4), (4, 5))       # cliques as variable indices
CLIQUES_META = tuple(
    (rows, tuple(DOMAIN_SIZES[r] for r in rows)) for rows in CLIQUE_ROWS
)
NUM_CLIQUES = len(CLIQUE_ROWS)
TABLE_SIZES = tuple(int(np.prod(dom)) for _, dom in CLIQUES_META)
TABLE_PAD = max(TABLE_SIZES)                            # padded table width

# Bit layout for packing all clique indices into one int32 word per world.
FIELD_BITS = tuple(int(np.ceil(np.log2(s))) for s in TABLE_SIZES)      # (3,5,4,3)
FIELD_SHIFTS = tuple(int(np.sum(FIELD_BITS[:c])) for c in range(NUM_CLIQUES))
assert sum(FIELD_BITS) <= 31, "packed clique indices must fit in int32"

LANES = 128           # worlds per lane row
TM_MAX = 1024         # max sublane rows per grid step (=> up to 128K worlds / step)


# --------------------------------- Pallas kernel ----------------------------------
def mrf_kernel(packed_ref, w_ref, out_ref):
    # packed_ref : (TM, 128) int32 VMEM -- bit-packed per-clique flat state indices
    # w_ref      : (C, TABLE_PAD) f32 SMEM -- effective weight tables (resc & 1/Z folded)
    # out_ref    : (TM, 128) f32 VMEM -- per-world potentials / Z
    packed = packed_ref[...]                                  # (TM, 128) int32
    probs = None
    for c in range(NUM_CLIQUES):
        size = TABLE_SIZES[c]
        shift = FIELD_SHIFTS[c]
        bits = FIELD_BITS[c]
        if c == NUM_CLIQUES - 1:
            # Topmost field: nothing packed above it, a single shift isolates it.
            field = packed >> shift                           # values 0 .. size-1

            def key(t):                                       # compare constants
                return t
        else:
            mask = ((1 << bits) - 1) << shift
            field = packed & mask                             # values t << shift

            def key(t, _s=shift):
                return t << _s

        # Table lookup as an unrolled select chain over the tiny static table.
        # (A lane gather would move this to the XLU; the select chain is the
        #  lowering-safe path and compares against immediates only.)
        pot = jnp.full(out_ref.shape, w_ref[c, 0], dtype=jnp.float32)
        for t in range(1, size):
            pot = jnp.where(field == key(t), w_ref[c, t], pot)
        probs = pot if probs is None else probs * pot
    out_ref[...] = probs
    # TODO(synk): discriminative=True / reshape normalisation is a data-dependent
    # global renormalisation across worlds; it is left to the JAX wrapper level.


# ---------------------------------- wrapper ---------------------------------------
def _pack_clique_indices(x):
    """x: (N, V) int32 worlds -> (N,) int32 bit-packed per-clique flat indices."""
    packed = jnp.zeros((x.shape[0],), jnp.int32)
    for c, (rows, domains) in enumerate(CLIQUES_META):
        idx = jnp.zeros((x.shape[0],), jnp.int32)
        for r, d in zip(rows, domains):
            idx = idx * d + x[:, r].astype(jnp.int32)
        packed = packed | (idx << FIELD_SHIFTS[c])
    return packed


def fold_tables(clique_tables, rescalings, Z):
    """Fold per-clique rescalings and 1/Z into the weight tables (wrapper-side)."""
    z_share = jnp.asarray(Z, jnp.float32) ** (-1.0 / NUM_CLIQUES)
    return (clique_tables * rescalings[:, None] * z_share).astype(jnp.float32)


def markov_forward(x, tables_eff, tm=None):
    """x: (N, V) int32 worlds. tables_eff: (C, TABLE_PAD) f32 (already folded).
    Returns (N,) float32 potentials / Z."""
    N = x.shape[0]
    packed = _pack_clique_indices(x)                      # (N,) int32

    R = pl.cdiv(N, LANES)                                 # sublane rows needed
    if tm is None:
        # Big tiles to amortize per-step overhead, but keep >=2 grid steps so the
        # parallel axis can shard across both TensorCores on megacore parts.
        tm = min(TM_MAX, max(8, pl.cdiv(R, 2)))
    tm = max(8, (tm // 8) * 8)                            # (8,128) tiling constraint
    Rp = pl.cdiv(R, tm) * tm
    Np = Rp * LANES

    # Pad with state-0 worlds (valid table entries), slice back afterwards.
    packed = jnp.pad(packed, (0, Np - N)).reshape(Rp, LANES)

    grid = (Rp // tm,)
    out = pl.pallas_call(
        mrf_kernel,
        out_shape=jax.ShapeDtypeStruct((Rp, LANES), jnp.float32),
        grid=grid,
        in_specs=[
            pl.BlockSpec((tm, LANES), lambda i: (i, 0)),                   # packed idx
            pl.BlockSpec(memory_space=pltpu.MemorySpace.SMEM),             # tables
        ],
        out_specs=pl.BlockSpec((tm, LANES), lambda i: (i, 0)),
        compiler_params=pltpu.CompilerParams(
            dimension_semantics=("parallel",),
        ),
    )(packed, tables_eff)
    return out.reshape(Np)[:N]


# ------------------------------ pure-JAX reference --------------------------------
def markov_forward_ref(x, clique_tables, rescalings, Z):
    probs = jnp.ones((x.shape[0],), jnp.float32)
    for c, (rows, domains) in enumerate(CLIQUES_META):
        idx = jnp.zeros((x.shape[0],), jnp.int32)
        for r, d in zip(rows, domains):
            idx = idx * d + x[:, r]
        probs = probs * clique_tables[c, idx] * rescalings[c]
    return probs / Z


# ------------------------------------ main -----------------------------------------
if __name__ == "__main__":
    key = jax.random.PRNGKey(0)
    N = 8192  # number of worlds to query

    # Deterministic worlds: each column holds a state index for its variable.
    key, *vkeys = jax.random.split(key, len(DOMAIN_SIZES) + 1)
    cols = [
        jax.random.randint(vk, (N,), 0, d, dtype=jnp.int32)
        for vk, d in zip(vkeys, DOMAIN_SIZES)
    ]
    x = jnp.stack(cols, axis=1)                      # (N, V) int32

    # Deterministic clique weight tables (DiscreteFactor parameters), padded & stacked.
    tables = np.zeros((NUM_CLIQUES, TABLE_PAD), dtype=np.float32)
    for c, size in enumerate(TABLE_SIZES):
        key, wk = jax.random.split(key)
        tables[c, :size] = np.asarray(
            jax.random.uniform(wk, (size,), minval=0.1, maxval=1.0, dtype=jnp.float32)
        )
    clique_tables = jnp.asarray(tables)              # (C, TABLE_PAD) f32

    # Non-trivial rescalings (notp/2 as in fit()) and Z, to exercise the folding.
    rescalings = jnp.asarray([s / 2.0 for s in TABLE_SIZES], jnp.float32)
    Z = jnp.float32(2.5)

    tables_eff = fold_tables(clique_tables, rescalings, Z)

    out = markov_forward(x, tables_eff)
    out = jax.block_until_ready(out)

    ref = markov_forward_ref(x, clique_tables, rescalings, Z)
    np.testing.assert_allclose(np.asarray(out), np.asarray(ref), rtol=2e-5, atol=1e-7)

    print("KERNEL_OK")
</pallas_src>

<mosaic_0001>
module attributes {stable_mosaic.version = 11 : i64} {
  func.func @mrf_kernel(%arg0: i32, %arg1: memref<32x128xi32, #tpu.memory_space<vmem>>, %arg2: memref<4x24xf32, #tpu.memory_space<smem>>, %arg3: memref<32x128xf32, #tpu.memory_space<vmem>>) attributes {dimension_semantics = [#tpu.dimension_semantics<parallel>], iteration_bounds = array<i64: 2>, scalar_prefetch = 0 : i64, scratch_operands = 0 : i64, tpu.core_type = #tpu.core_type<tc>, window_params = [{transform_indices = @transform_0, window_bounds = array<i64: 32, 128>}, {transform_indices = @transform_1, window_bounds = array<i64: 4, 24>}, {transform_indices = @transform_2, window_bounds = array<i64: 32, 128>}]} {
    %c0 = arith.constant 0 : index
    %c0_0 = arith.constant 0 : index
    %0 = vector.load %arg1[%c0, %c0_0] : memref<32x128xi32, #tpu.memory_space<vmem>>, vector<32x128xi32>
    %c7_i32 = arith.constant 7 : i32
    %1 = vector.broadcast %c7_i32 : i32 to vector<32x128xi32>
    %2 = arith.andi %0, %1 : vector<32x128xi32>
    %c0_1 = arith.constant 0 : index
    %c0_2 = arith.constant 0 : index
    %3 = memref.load %arg2[%c0_1, %c0_2] : memref<4x24xf32, #tpu.memory_space<smem>>
    %4 = vector.broadcast %3 : f32 to vector<32x128xf32>
    %c1_i32 = arith.constant 1 : i32
    %5 = vector.broadcast %c1_i32 : i32 to vector<32x128xi32>
    %6 = arith.cmpi eq, %2, %5 : vector<32x128xi32>
    %c0_3 = arith.constant 0 : index
    %c1 = arith.constant 1 : index
    %7 = memref.load %arg2[%c0_3, %c1] : memref<4x24xf32, #tpu.memory_space<smem>>
    %8 = vector.broadcast %7 : f32 to vector<32x128xf32>
    %9 = arith.select %6, %8, %4 : vector<32x128xi1>, vector<32x128xf32>
    %c2_i32 = arith.constant 2 : i32
    %10 = vector.broadcast %c2_i32 : i32 to vector<32x128xi32>
    %11 = arith.cmpi eq, %2, %10 : vector<32x128xi32>
    %c0_4 = arith.constant 0 : index
    %c2 = arith.constant 2 : index
    %12 = memref.load %arg2[%c0_4, %c2] : memref<4x24xf32, #tpu.memory_space<smem>>
    %13 = vector.broadcast %12 : f32 to vector<32x128xf32>
    %14 = arith.select %11, %13, %9 : vector<32x128xi1>, vector<32x128xf32>
    %c3_i32 = arith.constant 3 : i32
    %15 = vector.broadcast %c3_i32 : i32 to vector<32x128xi32>
    %16 = arith.cmpi eq, %2, %15 : vector<32x128xi32>
    %c0_5 = arith.constant 0 : index
    %c3 = arith.constant 3 : index
    %17 = memref.load %arg2[%c0_5, %c3] : memref<4x24xf32, #tpu.memory_space<smem>>
    %18 = vector.broadcast %17 : f32 to vector<32x128xf32>
    %19 = arith.select %16, %18, %14 : vector<32x128xi1>, vector<32x128xf32>
    %c4_i32 = arith.constant 4 : i32
    %20 = vector.broadcast %c4_i32 : i32 to vector<32x128xi32>
    %21 = arith.cmpi eq, %2, %20 : vector<32x128xi32>
    %c0_6 = arith.constant 0 : index
    %c4 = arith.constant 4 : index
    %22 = memref.load %arg2[%c0_6, %c4] : memref<4x24xf32, #tpu.memory_space<smem>>
    %23 = vector.broadcast %22 : f32 to vector<32x128xf32>
    %24 = arith.select %21, %23, %19 : vector<32x128xi1>, vector<32x128xf32>
    %c5_i32 = arith.constant 5 : i32
    %25 = vector.broadcast %c5_i32 : i32 to vector<32x128xi32>
    %26 = arith.cmpi eq, %2, %25 : vector<32x128xi32>
    %c0_7 = arith.constant 0 : index
    %c5 = arith.constant 5 : index
    %27 = memref.load %arg2[%c0_7, %c5] : memref<4x24xf32, #tpu.memory_space<smem>>
    %28 = vector.broadcast %27 : f32 to vector<32x128xf32>
    %29 = arith.select %26, %28, %24 : vector<32x128xi1>, vector<32x128xf32>
    %c248_i32 = arith.constant 248 : i32
    %30 = vector.broadcast %c248_i32 : i32 to vector<32x128xi32>
    %31 = arith.andi %0, %30 : vector<32x128xi32>
    %c1_8 = arith.constant 1 : index
    %c0_9 = arith.constant 0 : index
    %32 = memref.load %arg2[%c1_8, %c0_9] : memref<4x24xf32, #tpu.memory_space<smem>>
    %33 = vector.broadcast %32 : f32 to vector<32x128xf32>
    %c8_i32 = arith.constant 8 : i32
    %34 = vector.broadcast %c8_i32 : i32 to vector<32x128xi32>
    %35 = arith.cmpi eq, %31, %34 : vector<32x128xi32>
    %c1_10 = arith.constant 1 : index
    %c1_11 = arith.constant 1 : index
    %36 = memref.load %arg2[%c1_10, %c1_11] : memref<4x24xf32, #tpu.memory_space<smem>>
    %37 = vector.broadcast %36 : f32 to vector<32x128xf32>
    %38 = arith.select %35, %37, %33 : vector<32x128xi1>, vector<32x128xf32>
    %c16_i32 = arith.constant 16 : i32
    %39 = vector.broadcast %c16_i32 : i32 to vector<32x128xi32>
    %40 = arith.cmpi eq, %31, %39 : vector<32x128xi32>
    %c1_12 = arith.constant 1 : index
    %c2_13 = arith.constant 2 : index
    %41 = memref.load %arg2[%c1_12, %c2_13] : memref<4x24xf32, #tpu.memory_space<smem>>
    %42 = vector.broadcast %41 : f32 to vector<32x128xf32>
    %43 = arith.select %40, %42, %38 : vector<32x128xi1>, vector<32x128xf32>
    %c24_i32 = arith.constant 24 : i32
    %44 = vector.broadcast %c24_i32 : i32 to vector<32x128xi32>
    %45 = arith.cmpi eq, %31, %44 : vector<32x128xi32>
    %c1_14 = arith.constant 1 : index
    %c3_15 = arith.constant 3 : index
    %46 = memref.load %arg2[%c1_14, %c3_15] : memref<4x24xf32, #tpu.memory_space<smem>>
    %47 = vector.broadcast %46 : f32 to vector<32x128xf32>
    %48 = arith.select %45, %47, %43 : vector<32x128xi1>, vector<32x128xf32>
    %c32_i32 = arith.constant 32 : i32
    %49 = vector.broadcast %c32_i32 : i32 to vector<32x128xi32>
    %50 = arith.cmpi eq, %31, %49 : vector<32x128xi32>
    %c1_16 = arith.constant 1 : index
    %c4_17 = arith.constant 4 : index
    %51 = memref.load %arg2[%c1_16, %c4_17] : memref<4x24xf32, #tpu.memory_space<smem>>
    %52 = vector.broadcast %51 : f32 to vector<32x128xf32>
    %53 = arith.select %50, %52, %48 : vector<32x128xi1>, vector<32x128xf32>
    %c40_i32 = arith.constant 40 : i32
    %54 = vector.broadcast %c40_i32 : i32 to vector<32x128xi32>
    %55 = arith.cmpi eq, %31, %54 : vector<32x128xi32>
    %c1_18 = arith.constant 1 : index
    %c5_19 = arith.constant 5 : index
    %56 = memref.load %arg2[%c1_18, %c5_19] : memref<4x24xf32, #tpu.memory_space<smem>>
    %57 = vector.broadcast %56 : f32 to vector<32x128xf32>
    %58 = arith.select %55, %57, %53 : vector<32x128xi1>, vector<32x128xf32>
    %c48_i32 = arith.constant 48 : i32
    %59 = vector.broadcast %c48_i32 : i32 to vector<32x128xi32>
    %60 = arith.cmpi eq, %31, %59 : vector<32x128xi32>
    %c1_20 = arith.constant 1 : index
    %c6 = arith.constant 6 : index
    %61 = memref.load %arg2[%c1_20, %c6] : memref<4x24xf32, #tpu.memory_space<smem>>
    %62 = vector.broadcast %61 : f32 to vector<32x128xf32>
    %63 = arith.select %60, %62, %58 : vector<32x128xi1>, vector<32x128xf32>
    %c56_i32 = arith.constant 56 : i32
    %64 = vector.broadcast %c56_i32 : i32 to vector<32x128xi32>
    %65 = arith.cmpi eq, %31, %64 : vector<32x128xi32>
    %c1_21 = arith.constant 1 : index
    %c7 = arith.constant 7 : index
    %66 = memref.load %arg2[%c1_21, %c7] : memref<4x24xf32, #tpu.memory_space<smem>>
    %67 = vector.broadcast %66 : f32 to vector<32x128xf32>
    %68 = arith.select %65, %67, %63 : vector<32x128xi1>, vector<32x128xf32>
    %c64_i32 = arith.constant 64 : i32
    %69 = vector.broadcast %c64_i32 : i32 to vector<32x128xi32>
    %70 = arith.cmpi eq, %31, %69 : vector<32x128xi32>
    %c1_22 = arith.constant 1 : index
    %c8 = arith.constant 8 : index
    %71 = memref.load %arg2[%c1_22, %c8] : memref<4x24xf32, #tpu.memory_space<smem>>
    %72 = vector.broadcast %71 : f32 to vector<32x128xf32>
    %73 = arith.select %70, %72, %68 : vector<32x128xi1>, vector<32x128xf32>
    %c72_i32 = arith.constant 72 : i32
    %74 = vector.broadcast %c72_i32 : i32 to vector<32x128xi32>
    %75 = arith.cmpi eq, %31, %74 : vector<32x128xi32>
    %c1_23 = arith.constant 1 : index
    %c9 = arith.constant 9 : index
    %76 = memref.load %arg2[%c1_23, %c9] : memref<4x24xf32, #tpu.memory_space<smem>>
    %77 = vector.broadcast %76 : f32 to vector<32x128xf32>
    %78 = arith.select %75, %77, %73 : vector<32x128xi1>, vector<32x128xf32>
    %c80_i32 = arith.constant 80 : i32
    %79 = vector.broadcast %c80_i32 : i32 to vector<32x128xi32>
    %80 = arith.cmpi eq, %31, %79 : vector<32x128xi32>
    %c1_24 = arith.constant 1 : index
    %c10 = arith.constant 10 : index
    %81 = memref.load %arg2[%c1_24, %c10] : memref<4x24xf32, #tpu.memory_space<smem>>
    %82 = vector.broadcast %81 : f32 to vector<32x128xf32>
    %83 = arith.select %80, %82, %78 : vector<32x128xi1>, vector<32x128xf32>
    %c88_i32 = arith.constant 88 : i32
    %84 = vector.broadcast %c88_i32 : i32 to vector<32x128xi32>
    %85 = arith.cmpi eq, %31, %84 : vector<32x128xi32>
    %c1_25 = arith.constant 1 : index
    %c11 = arith.constant 11 : index
    %86 = memref.load %arg2[%c1_25, %c11] : memref<4x24xf32, #tpu.memory_space<smem>>
    %87 = vector.broadcast %86 : f32 to vector<32x128xf32>
    %88 = arith.select %85, %87, %83 : vector<32x128xi1>, vector<32x128xf32>
    %c96_i32 = arith.constant 96 : i32
    %89 = vector.broadcast %c96_i32 : i32 to vector<32x128xi32>
    %90 = arith.cmpi eq, %31, %89 : vector<32x128xi32>
    %c1_26 = arith.constant 1 : index
    %c12 = arith.constant 12 : index
    %91 = memref.load %arg2[%c1_26, %c12] : memref<4x24xf32, #tpu.memory_space<smem>>
    %92 = vector.broadcast %91 : f32 to vector<32x128xf32>
    %93 = arith.select %90, %92, %88 : vector<32x128xi1>, vector<32x128xf32>
    %c104_i32 = arith.constant 104 : i32
    %94 = vector.broadcast %c104_i32 : i32 to vector<32x128xi32>
    %95 = arith.cmpi eq, %31, %94 : vector<32x128xi32>
    %c1_27 = arith.constant 1 : index
    %c13 = arith.constant 13 : index
    %96 = memref.load %arg2[%c1_27, %c13] : memref<4x24xf32, #tpu.memory_space<smem>>
    %97 = vector.broadcast %96 : f32 to vector<32x128xf32>
    %98 = arith.select %95, %97, %93 : vector<32x128xi1>, vector<32x128xf32>
    %c112_i32 = arith.constant 112 : i32
    %99 = vector.broadcast %c112_i32 : i32 to vector<32x128xi32>
    %100 = arith.cmpi eq, %31, %99 : vector<32x128xi32>
    %c1_28 = arith.constant 1 : index
    %c14 = arith.constant 14 : index
    %101 = memref.load %arg2[%c1_28, %c14] : memref<4x24xf32, #tpu.memory_space<smem>>
    %102 = vector.broadcast %101 : f32 to vector<32x128xf32>
    %103 = arith.select %100, %102, %98 : vector<32x128xi1>, vector<32x128xf32>
    %c120_i32 = arith.constant 120 : i32
    %104 = vector.broadcast %c120_i32 : i32 to vector<32x128xi32>
    %105 = arith.cmpi eq, %31, %104 : vector<32x128xi32>
    %c1_29 = arith.constant 1 : index
    %c15 = arith.constant 15 : index
    %106 = memref.load %arg2[%c1_29, %c15] : memref<4x24xf32, #tpu.memory_space<smem>>
    %107 = vector.broadcast %106 : f32 to vector<32x128xf32>
    %108 = arith.select %105, %107, %103 : vector<32x128xi1>, vector<32x128xf32>
    %c128_i32 = arith.constant 128 : i32
    %109 = vector.broadcast %c128_i32 : i32 to vector<32x128xi32>
    %110 = arith.cmpi eq, %31, %109 : vector<32x128xi32>
    %c1_30 = arith.constant 1 : index
    %c16 = arith.constant 16 : index
    %111 = memref.load %arg2[%c1_30, %c16] : memref<4x24xf32, #tpu.memory_space<smem>>
    %112 = vector.broadcast %111 : f32 to vector<32x128xf32>
    %113 = arith.select %110, %112, %108 : vector<32x128xi1>, vector<32x128xf32>
    %c136_i32 = arith.constant 136 : i32
    %114 = vector.broadcast %c136_i32 : i32 to vector<32x128xi32>
    %115 = arith.cmpi eq, %31, %114 : vector<32x128xi32>
    %c1_31 = arith.constant 1 : index
    %c17 = arith.constant 17 : index
    %116 = memref.load %arg2[%c1_31, %c17] : memref<4x24xf32, #tpu.memory_space<smem>>
    %117 = vector.broadcast %116 : f32 to vector<32x128xf32>
    %118 = arith.select %115, %117, %113 : vector<32x128xi1>, vector<32x128xf32>
    %c144_i32 = arith.constant 144 : i32
    %119 = vector.broadcast %c144_i32 : i32 to vector<32x128xi32>
    %120 = arith.cmpi eq, %31, %119 : vector<32x128xi32>
    %c1_32 = arith.constant 1 : index
    %c18 = arith.constant 18 : index
    %121 = memref.load %arg2[%c1_32, %c18] : memref<4x24xf32, #tpu.memory_space<smem>>
    %122 = vector.broadcast %121 : f32 to vector<32x128xf32>
    %123 = arith.select %120, %122, %118 : vector<32x128xi1>, vector<32x128xf32>
    %c152_i32 = arith.constant 152 : i32
    %124 = vector.broadcast %c152_i32 : i32 to vector<32x128xi32>
    %125 = arith.cmpi eq, %31, %124 : vector<32x128xi32>
    %c1_33 = arith.constant 1 : index
    %c19 = arith.constant 19 : index
    %126 = memref.load %arg2[%c1_33, %c19] : memref<4x24xf32, #tpu.memory_space<smem>>
    %127 = vector.broadcast %126 : f32 to vector<32x128xf32>
    %128 = arith.select %125, %127, %123 : vector<32x128xi1>, vector<32x128xf32>
    %c160_i32 = arith.constant 160 : i32
    %129 = vector.broadcast %c160_i32 : i32 to vector<32x128xi32>
    %130 = arith.cmpi eq, %31, %129 : vector<32x128xi32>
    %c1_34 = arith.constant 1 : index
    %c20 = arith.constant 20 : index
    %131 = memref.load %arg2[%c1_34, %c20] : memref<4x24xf32, #tpu.memory_space<smem>>
    %132 = vector.broadcast %131 : f32 to vector<32x128xf32>
    %133 = arith.select %130, %132, %128 : vector<32x128xi1>, vector<32x128xf32>
    %c168_i32 = arith.constant 168 : i32
    %134 = vector.broadcast %c168_i32 : i32 to vector<32x128xi32>
    %135 = arith.cmpi eq, %31, %134 : vector<32x128xi32>
    %c1_35 = arith.constant 1 : index
    %c21 = arith.constant 21 : index
    %136 = memref.load %arg2[%c1_35, %c21] : memref<4x24xf32, #tpu.memory_space<smem>>
    %137 = vector.broadcast %136 : f32 to vector<32x128xf32>
    %138 = arith.select %135, %137, %133 : vector<32x128xi1>, vector<32x128xf32>
    %c176_i32 = arith.constant 176 : i32
    %139 = vector.broadcast %c176_i32 : i32 to vector<32x128xi32>
    %140 = arith.cmpi eq, %31, %139 : vector<32x128xi32>
    %c1_36 = arith.constant 1 : index
    %c22 = arith.constant 22 : index
    %141 = memref.load %arg2[%c1_36, %c22] : memref<4x24xf32, #tpu.memory_space<smem>>
    %142 = vector.broadcast %141 : f32 to vector<32x128xf32>
    %143 = arith.select %140, %142, %138 : vector<32x128xi1>, vector<32x128xf32>
    %c184_i32 = arith.constant 184 : i32
    %144 = vector.broadcast %c184_i32 : i32 to vector<32x128xi32>
    %145 = arith.cmpi eq, %31, %144 : vector<32x128xi32>
    %c1_37 = arith.constant 1 : index
    %c23 = arith.constant 23 : index
    %146 = memref.load %arg2[%c1_37, %c23] : memref<4x24xf32, #tpu.memory_space<smem>>
    %147 = vector.broadcast %146 : f32 to vector<32x128xf32>
    %148 = arith.select %145, %147, %143 : vector<32x128xi1>, vector<32x128xf32>
    %149 = arith.mulf %29, %148 : vector<32x128xf32>
    %c3840_i32 = arith.constant 3840 : i32
    %150 = vector.broadcast %c3840_i32 : i32 to vector<32x128xi32>
    %151 = arith.andi %0, %150 : vector<32x128xi32>
    %c2_38 = arith.constant 2 : index
    %c0_39 = arith.constant 0 : index
    %152 = memref.load %arg2[%c2_38, %c0_39] : memref<4x24xf32, #tpu.memory_space<smem>>
    %153 = vector.broadcast %152 : f32 to vector<32x128xf32>
    %c256_i32 = arith.constant 256 : i32
    %154 = vector.broadcast %c256_i32 : i32 to vector<32x128xi32>
    %155 = arith.cmpi eq, %151, %154 : vector<32x128xi32>
    %c2_40 = arith.constant 2 : index
    %c1_41 = arith.constant 1 : index
    %156 = memref.load %arg2[%c2_40, %c1_41] : memref<4x24xf32, #tpu.memory_space<smem>>
    %157 = vector.broadcast %156 : f32 to vector<32x128xf32>
    %158 = arith.select %155, %157, %153 : vector<32x128xi1>, vector<32x128xf32>
    %c512_i32 = arith.constant 512 : i32
    %159 = vector.broadcast %c512_i32 : i32 to vector<32x128xi32>
    %160 = arith.cmpi eq, %151, %159 : vector<32x128xi32>
    %c2_42 = arith.constant 2 : index
    %c2_43 = arith.constant 2 : index
    %161 = memref.load %arg2[%c2_42, %c2_43] : memref<4x24xf32, #tpu.memory_space<smem>>
    %162 = vector.broadcast %161 : f32 to vector<32x128xf32>
    %163 = arith.select %160, %162, %158 : vector<32x128xi1>, vector<32x128xf32>
    %c768_i32 = arith.constant 768 : i32
    %164 = vector.broadcast %c768_i32 : i32 to vector<32x128xi32>
    %165 = arith.cmpi eq, %151, %164 : vector<32x128xi32>
    %c2_44 = arith.constant 2 : index
    %c3_45 = arith.constant 3 : index
    %166 = memref.load %arg2[%c2_44, %c3_45] : memref<4x24xf32, #tpu.memory_space<smem>>
    %167 = vector.broadcast %166 : f32 to vector<32x128xf32>
    %168 = arith.select %165, %167, %163 : vector<32x128xi1>, vector<32x128xf32>
    %c1024_i32 = arith.constant 1024 : i32
    %169 = vector.broadcast %c1024_i32 : i32 to vector<32x128xi32>
    %170 = arith.cmpi eq, %151, %169 : vector<32x128xi32>
    %c2_46 = arith.constant 2 : index
    %c4_47 = arith.constant 4 : index
    %171 = memref.load %arg2[%c2_46, %c4_47] : memref<4x24xf32, #tpu.memory_space<smem>>
    %172 = vector.broadcast %171 : f32 to vector<32x128xf32>
    %173 = arith.select %170, %172, %168 : vector<32x128xi1>, vector<32x128xf32>
    %c1280_i32 = arith.constant 1280 : i32
    %174 = vector.broadcast %c1280_i32 : i32 to vector<32x128xi32>
    %175 = arith.cmpi eq, %151, %174 : vector<32x128xi32>
    %c2_48 = arith.constant 2 : index
    %c5_49 = arith.constant 5 : index
    %176 = memref.load %arg2[%c2_48, %c5_49] : memref<4x24xf32, #tpu.memory_space<smem>>
    %177 = vector.broadcast %176 : f32 to vector<32x128xf32>
    %178 = arith.select %175, %177, %173 : vector<32x128xi1>, vector<32x128xf32>
    %c1536_i32 = arith.constant 1536 : i32
    %179 = vector.broadcast %c1536_i32 : i32 to vector<32x128xi32>
    %180 = arith.cmpi eq, %151, %179 : vector<32x128xi32>
    %c2_50 = arith.constant 2 : index
    %c6_51 = arith.constant 6 : index
    %181 = memref.load %arg2[%c2_50, %c6_51] : memref<4x24xf32, #tpu.memory_space<smem>>
    %182 = vector.broadcast %181 : f32 to vector<32x128xf32>
    %183 = arith.select %180, %182, %178 : vector<32x128xi1>, vector<32x128xf32>
    %c1792_i32 = arith.constant 1792 : i32
    %184 = vector.broadcast %c1792_i32 : i32 to vector<32x128xi32>
    %185 = arith.cmpi eq, %151, %184 : vector<32x128xi32>
    %c2_52 = arith.constant 2 : index
    %c7_53 = arith.constant 7 : index
    %186 = memref.load %arg2[%c2_52, %c7_53] : memref<4x24xf32, #tpu.memory_space<smem>>
    %187 = vector.broadcast %186 : f32 to vector<32x128xf32>
    %188 = arith.select %185, %187, %183 : vector<32x128xi1>, vector<32x128xf32>
    %c2048_i32 = arith.constant 2048 : i32
    %189 = vector.broadcast %c2048_i32 : i32 to vector<32x128xi32>
    %190 = arith.cmpi eq, %151, %189 : vector<32x128xi32>
    %c2_54 = arith.constant 2 : index
    %c8_55 = arith.constant 8 : index
    %191 = memref.load %arg2[%c2_54, %c8_55] : memref<4x24xf32, #tpu.memory_space<smem>>
    %192 = vector.broadcast %191 : f32 to vector<32x128xf32>
    %193 = arith.select %190, %192, %188 : vector<32x128xi1>, vector<32x128xf32>
    %c2304_i32 = arith.constant 2304 : i32
    %194 = vector.broadcast %c2304_i32 : i32 to vector<32x128xi32>
    %195 = arith.cmpi eq, %151, %194 : vector<32x128xi32>
    %c2_56 = arith.constant 2 : index
    %c9_57 = arith.constant 9 : index
    %196 = memref.load %arg2[%c2_56, %c9_57] : memref<4x24xf32, #tpu.memory_space<smem>>
    %197 = vector.broadcast %196 : f32 to vector<32x128xf32>
    %198 = arith.select %195, %197, %193 : vector<32x128xi1>, vector<32x128xf32>
    %c2560_i32 = arith.constant 2560 : i32
    %199 = vector.broadcast %c2560_i32 : i32 to vector<32x128xi32>
    %200 = arith.cmpi eq, %151, %199 : vector<32x128xi32>
    %c2_58 = arith.constant 2 : index
    %c10_59 = arith.constant 10 : index
    %201 = memref.load %arg2[%c2_58, %c10_59] : memref<4x24xf32, #tpu.memory_space<smem>>
    %202 = vector.broadcast %201 : f32 to vector<32x128xf32>
    %203 = arith.select %200, %202, %198 : vector<32x128xi1>, vector<32x128xf32>
    %c2816_i32 = arith.constant 2816 : i32
    %204 = vector.broadcast %c2816_i32 : i32 to vector<32x128xi32>
    %205 = arith.cmpi eq, %151, %204 : vector<32x128xi32>
    %c2_60 = arith.constant 2 : index
    %c11_61 = arith.constant 11 : index
    %206 = memref.load %arg2[%c2_60, %c11_61] : memref<4x24xf32, #tpu.memory_space<smem>>
    %207 = vector.broadcast %206 : f32 to vector<32x128xf32>
    %208 = arith.select %205, %207, %203 : vector<32x128xi1>, vector<32x128xf32>
    %209 = arith.mulf %149, %208 : vector<32x128xf32>
    %c12_i32 = arith.constant 12 : i32
    %210 = vector.broadcast %c12_i32 : i32 to vector<32x128xi32>
    %211 = arith.shrsi %0, %210 : vector<32x128xi32>
    %c3_62 = arith.constant 3 : index
    %c0_63 = arith.constant 0 : index
    %212 = memref.load %arg2[%c3_62, %c0_63] : memref<4x24xf32, #tpu.memory_space<smem>>
    %213 = vector.broadcast %212 : f32 to vector<32x128xf32>
    %c1_i32_64 = arith.constant 1 : i32
    %214 = vector.broadcast %c1_i32_64 : i32 to vector<32x128xi32>
    %215 = arith.cmpi eq, %211, %214 : vector<32x128xi32>
    %c3_65 = arith.constant 3 : index
    %c1_66 = arith.constant 1 : index
    %216 = memref.load %arg2[%c3_65, %c1_66] : memref<4x24xf32, #tpu.memory_space<smem>>
    %217 = vector.broadcast %216 : f32 to vector<32x128xf32>
    %218 = arith.select %215, %217, %213 : vector<32x128xi1>, vector<32x128xf32>
    %c2_i32_67 = arith.constant 2 : i32
    %219 = vector.broadcast %c2_i32_67 : i32 to vector<32x128xi32>
    %220 = arith.cmpi eq, %211, %219 : vector<32x128xi32>
    %c3_68 = arith.constant 3 : index
    %c2_69 = arith.constant 2 : index
    %221 = memref.load %arg2[%c3_68, %c2_69] : memref<4x24xf32, #tpu.memory_space<smem>>
    %222 = vector.broadcast %221 : f32 to vector<32x128xf32>
    %223 = arith.select %220, %222, %218 : vector<32x128xi1>, vector<32x128xf32>
    %c3_i32_70 = arith.constant 3 : i32
    %224 = vector.broadcast %c3_i32_70 : i32 to vector<32x128xi32>
    %225 = arith.cmpi eq, %211, %224 : vector<32x128xi32>
    %c3_71 = arith.constant 3 : index
    %c3_72 = arith.constant 3 : index
    %226 = memref.load %arg2[%c3_71, %c3_72] : memref<4x24xf32, #tpu.memory_space<smem>>
    %227 = vector.broadcast %226 : f32 to vector<32x128xf32>
    %228 = arith.select %225, %227, %223 : vector<32x128xi1>, vector<32x128xf32>
    %c4_i32_73 = arith.constant 4 : i32
    %229 = vector.broadcast %c4_i32_73 : i32 to vector<32x128xi32>
    %230 = arith.cmpi eq, %211, %229 : vector<32x128xi32>
    %c3_74 = arith.constant 3 : index
    %c4_75 = arith.constant 4 : index
    %231 = memref.load %arg2[%c3_74, %c4_75] : memref<4x24xf32, #tpu.memory_space<smem>>
    %232 = vector.broadcast %231 : f32 to vector<32x128xf32>
    %233 = arith.select %230, %232, %228 : vector<32x128xi1>, vector<32x128xf32>
    %c5_i32_76 = arith.constant 5 : i32
    %234 = vector.broadcast %c5_i32_76 : i32 to vector<32x128xi32>
    %235 = arith.cmpi eq, %211, %234 : vector<32x128xi32>
    %c3_77 = arith.constant 3 : index
    %c5_78 = arith.constant 5 : index
    %236 = memref.load %arg2[%c3_77, %c5_78] : memref<4x24xf32, #tpu.memory_space<smem>>
    %237 = vector.broadcast %236 : f32 to vector<32x128xf32>
    %238 = arith.select %235, %237, %233 : vector<32x128xi1>, vector<32x128xf32>
    %239 = arith.mulf %209, %238 : vector<32x128xf32>
    %c0_79 = arith.constant 0 : index
    %c0_80 = arith.constant 0 : index
    %240 = vector.load %arg3[%c0_79, %c0_80] : memref<32x128xf32, #tpu.memory_space<vmem>>, vector<32x128xf32>
    tpu.vector_store %arg3[%c0_79, %c0_80], %239 {strides = array<i32>} : memref<32x128xf32, #tpu.memory_space<vmem>>, vector<32x128xf32>,
    return
  }
  func.func @transform_0(%arg0: i32) -> (i32, i32) {
    %c0_i32 = arith.constant 0 : i32
    %c0_i32_0 = arith.constant 0 : i32
    return %arg0, %c0_i32 : i32, i32
  }
  func.func @transform_1(%arg0: i32) -> (i32, i32) {
    %c0_i32 = arith.constant 0 : i32
    %c0_i32_0 = arith.constant 0 : i32
    %c0_i32_1 = arith.constant 0 : i32
    return %c0_i32, %c0_i32_0 : i32, i32
  }
  func.func @transform_2(%arg0: i32) -> (i32, i32) {
    %c0_i32 = arith.constant 0 : i32
    %c0_i32_0 = arith.constant 0 : i32
    return %arg0, %c0_i32 : i32, i32
  }
}

</mosaic_0001>

<bundles_post_ra>
// kernel: tpu_custom_call.1
= control target key start
LH: loop header
LB: loop body
LE: loop exit
PB: predicated region body
PF: predicated region fallthrough
CT: control target
= control target key end

     0   :  { %7 = vsyncpa [#allocation3], 0  ;;  %s1542_s0 = inlined_call_operand.hbm [shape: s32[64,128], index: 0, kind: input, shape index: {}]   ;;  %s1543_s1 = inlined_call_operand.hbm [shape: f32[4,24], index: 1, kind: input, shape index: {}]   ;;  %s1544_s2 = inlined_call_operand.hbm [shape: f32[64,128], index: 2, kind: output, shape index: {}]  }
   0x1   :  { %9 = vsyncpa [#allocation3 + $0x1], 0 }
   0x2   :  { %10 = vsyncpa [#allocation5], 0 }
   0x3   :  { %11 = vsyncpa [#allocation4], 0 }
   0x4   :  { %13 = vsyncpa [#allocation4 + $0x1], 0  ;;  %s1016_s9 = smov 0   ;;  %s1018_s10 = smov 0  }
   0x5   :  { %s1020_s11 = smov 0   ;;  %s1022_s12 = smov 0  }
   0x6 LB: > { %s1037_s13 = sadd.s32 4294967295, %s992_s12   ;;  %s759_s14 = sadd.s32 4294967294, %s992_s12   ;;  %s992_s12 = sphi %s1022_s12, %s1572_s12   ;;  %s988_s11 = sphi %s1020_s11, %s1571_s11   ;;  %s984_s10 = sphi %s1018_s10, %s1570_s10   ;;  %s980_s9 = sphi %s1016_s9, %s1569_s9  }
   0x7   : > { %s1041_s15 = sadd.s32 1, %s992_s12   ;;  %s26_s16 = sadd.s32 1, %s988_s11 }
   0x8   : > { %s23_s17 = ssub.s32 %s992_s12, %s1041_s15  ;;  %p33_p0 = scmp.ne.s32.totalorder %s988_s11, %s984_s10 }
   0x9   : > { %p24_p1 = scmp.eq.s32.totalorder %s23_s17, 0  ;;  %p34_p2 = scmp.eq.s32.totalorder %s992_s12, 0 }
   0xa   : > { %p39_p3 = scmp.ne.s32.totalorder %s984_s10, %s980_s9  ;;  %p1545_p4 = scmp.eq.s32.totalorder %s1037_s13, 0 }
   0xb   : > { %s1053_s18 = scalar_select %p24_p1, %s988_s11, %s26_s16  }
   0xc   : > { %p1055_p5 = por %p34_p2, %p33_p0  ;;  %p1061_p6 = por %p1545_p4, %p39_p3 }
   0xd   : > { %p84_p7 = scmp.eq.s32.totalorder %s1037_s13, 1  ;;  %p90_p8 = scmp.eq.s32.totalorder %s759_s14, 1 }
   0xe   : > { %s1550_s20 = scalar_select %p1061_p6, 1, 0 }
   0xf   : > { %p760_p9 = scmp.ge.s32.totalorder %s992_s12, 1  ;;  %p97_p10 = scmp.lt.s32.totalorder %s992_s12, 3 }
  0x10   : > { %p1068_p11 = por %p84_p7, %p33_p0  ;;  %p1072_p12 = por %p90_p8, %p39_p3 }
  0x11   : > { %p1076_p13 = pnand %p760_p9, %p97_p10  ;;  %p845_p4 = scmp.lt.s32.totalorder %s992_s12, 2 }
  0x12   : > { %s1551_s21 = scalar_select %p1068_p11, 1, 0 }
  0x13   : > { %s1552_s22 = scalar_select %p1072_p12, 1, 0 }
  0x14   : > { %s1553_s23 = scalar_select %p1076_p13, 1, 0 }
  0x15   : > { %p832_p2 = pneg %p1076_p13  ;;  %s119_s24 = sand.u32 1, %s988_s11  }
  0x16   : > { %s822_s25 = sshll.u32 %s992_s12, 9  ;;  %p1554_p6 = scmp.eq.s32.totalorder %s1037_s13, 0 }
  0x17   : > { %p1090_p7 = pnand %p845_p4, %p1055_p5  ;;  %s763_s27 = sshll.u32 %s119_s24, 5 }
  0x18   : > { %p833_p0 = pnand %p832_p2, %p1554_p6  ;;  %s994_s28 = smov [#allocation6]  }
  0x19   : > { %s1100_s5 = scalar_lea.hbm %s1542_s0, %s822_s25  ;;  %s123_s6 = scalar_lea.vmem [#allocation2], %s763_s27 }
  0x1a   : > { %835 = dma.hbm_to_smem (!%p833_p0), %s1543_s1, 64, %s994_s28, [#allocation5]  }
  0x1b   : > { %s130_s7 = sshll.u32 %s123_s6, 4  ;;  %s1104_s8 = scalar_lea.sflag [#allocation3], %s119_s24  ;;  %s1102_s7 = int_to_ptr.vmem [resolvable:$true] %s130_s7 }
  0x1c   : > { %s896_s14 = scalar_lea.hbm %s1100_s5, 512  ;;  %p898_p4 = pneg %p1090_p7 }
  0x1d   : > { %p897_p3 = scmp.ne.s32.totalorder %s1100_s5, %s896_s14  ;;  %s901_s19 = scalar_lea.hbm %s1542_s0, 1024 }
  0x1e   : > { %p902_p8 = scmp.lt.s32.totalorder %s1100_s5, %s1542_s0  ;;  %p903_p9 = scmp.lt.s32.totalorder %s901_s19, %s896_s14 }
  0x1f   : > { %p899_p5 = pnand %p898_p4, %p897_p3 }
  0x20   : > { %p904_p10 = por %p903_p9, %p902_p8 }
  0x21   : > { %p900_p6 = pneg %p899_p5 }
  0x23   : > { %p905_p2 = pnand %p904_p10, %p900_p6 }
  0x25   : > { %908 = shalt.err (!%p905_p2)
}
  0x26   : > { %s909_s24 = scalar_lea.vmem %s1102_s7, 512  ;;  %s995_s27 = smov [#allocation2]  }
  0x27   : > { %p910_p0 = scmp.ne.s32.totalorder %s1102_s7, %s909_s24  ;;  %s914_s29 = sshll.u32 %s995_s27, 4  ;;  %s915_s29 = int_to_ptr.vmem [resolvable:$false] %s914_s29 }
  0x28   : > { %s916_s30 = scalar_lea.vmem %s915_s29, 1024  ;;  %p917_p5 = scmp.lt.s32.totalorder %s1102_s7, %s915_s29 }
  0x29   : > { %p912_p1 = pnand %p910_p0, %p898_p4  ;;  %p918_p12 = scmp.lt.s32.totalorder %s916_s30, %s909_s24 }
  0x2b   : > { %p913_p3 = pneg %p912_p1  ;;  %p919_p11 = por %p918_p12, %p917_p5 }
  0x2d   : > { %p920_p13 = pnand %p919_p11, %p913_p3 }
  0x2f   : > { %923 = shalt.err (!%p920_p13)
}
  0x30   : > { %s996_s3 = smov 128   ;;  %s997_s4 = smov 8  }
  0x31   : > { %839 = dma.hbm_to_vmem [thread:$0]  (!%p1090_p7), %s1100_s5, 512, %s1102_s7, %s1104_s8, %s996_s3, %s996_s3, %s997_s4  }
  0x32   : > { %p1556_p4 = scmp.ne.s32.totalorder %s1553_s23, 0 }
  0x33   : > { %s1128_s6 = sand.u32 (!%p1556_p4), 1, %s984_s10   ;;  %p1557_p11 = scmp.ne.s32.totalorder (!%p1556_p4), %s1550_s20, 0 }
  0x34   : > { %142 = sbr.rel (%p1556_p4) target bundleno = 189 (0xbd), region = 28  ;;  %s767_s14 = sshll.u32 (!%p1556_p4), %s1128_s6, 5 }
  0x35   : > { %s145_s16 = scalar_lea.sflag (!%p1556_p4), [#allocation3], %s1128_s6  ;;  %s148_s17 = scalar_lea.vmem (!%p1556_p4), [#allocation2], %s767_s14 }
  0x39   : > { %967 = dma.done.wait (%p1557_p11), %s145_s16, 512  }
  0x3a   : > { %969 = vsyncadd (%p1557_p11), %s145_s16, 4294966784  ;;  %p1558_p12 = scmp.eq.s32.totalorder %s1037_s13, 0 }
  0x3c   : > { %971 = dma.done.wait (%p1558_p12), [#allocation5], 64   ;;  %p1559_p13 = pmov %p1558_p12 }
  0x3e   : > { %973 = vsyncadd (%p1559_p13), [#allocation5], 4294967232 }
  0x3f   : > { %157 = sfence }
  0x40   : > { %v1142_v0 = vld [vmem:[%s148_s17] sm:$0xff]  ;;  %v1144_v1 = vld [vmem:[%s148_s17 + $0x8] sm:$0xff]  ;;  %v1146_v2 = vld [vmem:[%s148_s17 + $0x10] sm:$0xff]  ;;  %s184_s23 = sld [smem:[#allocation6]]  ;;  %p1566_p7 = scmp.ne.s32.totalorder %s1551_s21, 0 }
  0x41   : > { %v1148_v3 = vld [vmem:[%s148_s17 + $0x18] sm:$0xff]  ;;  %v180_v4 = vand.u32 7, %v1142_v0  ;;  %v181_v5 = vand.u32 7, %v1144_v1  ;;  %v182_v6 = vand.u32 7, %v1146_v2  ;;  %s770_s20 = sld [smem:[#allocation6 + $0x1]]  ;;  %v1157_v8 = vand.u32 248, %v1142_v0 }
  0x42   : > { %v183_v7 = vand.u32 7, %v1148_v3  ;;  %s1154_s26 = sld [smem:[#allocation6 + $0x2]]  ;;  %v1160_v9 = vand.u32 248, %v1144_v1  ;;  %v1163_v10 = vand.u32 248, %v1146_v2  ;;  %v1186_v29 = vand.u32 248, %v1148_v3 }
  0x43   : > { %vm186_vm0 = vcmp.eq.s32.totalorder %v180_v4, 1  ;;  %vm187_vm1 = vcmp.eq.s32.totalorder %v181_v5, 1  ;;  %vm188_vm2 = vcmp.eq.s32.totalorder %v182_v6, 1  ;;  %s772_s5 = sld [smem:[#allocation6 + $0x3]]  ;;  %vm197_vm5 = vcmp.eq.s32.totalorder %v181_v5, 2 }
  0x44   : > { %vm198_vm6 = vcmp.eq.s32.totalorder %v182_v6, 2  ;;  %vm199_vm7 = vcmp.eq.s32.totalorder %v183_v7, 2  ;;  %s1165_s7 = sld [smem:[#allocation6 + $0x4]]  ;;  %vm206_vm8 = vcmp.eq.s32.totalorder %v180_v4, 3  ;;  %vm208_vm10 = vcmp.eq.s32.totalorder %v182_v6, 3 }
  0x45   : > { %vm209_vm11 = vcmp.eq.s32.totalorder %v183_v7, 3  ;;  %s774_s8 = sld [smem:[#allocation6 + $0x5]]  ;;  %vm219_vm15 = vcmp.eq.s32.totalorder %v183_v7, 4  ;;  %vm226_vm3 = vcmp.eq.s32.totalorder %v180_v4, 5  ;;  %vm227_vm4 = vcmp.eq.s32.totalorder %v181_v5, 5 }
  0x46   : > { %v185_v11 = vstv %s184_s23  ;;  %s775_s19 = sld [smem:[#allocation6 + $0x80]]  ;;  %vm1560_vm9 = vcmp.eq.s32.totalorder %v183_v7, 1  ;;  %vm228_vm13 = vcmp.eq.s32.totalorder %v182_v6, 5  ;;  %vm229_vm14 = vcmp.eq.s32.totalorder %v183_v7, 5 }
  0x47   : > { %v191_v12 = vstv %s770_s20  ;;  %s1171_s25 = sld [smem:[#allocation6 + $0x81]]  ;;  %vm1561_vm12 = vcmp.eq.s32.totalorder %v180_v4, 2 }
  0x48   : > { %v192_v13 = vsel %vm186_vm0, %v191_v12, %v185_v11  ;;  %v193_v14 = vsel %vm187_vm1, %v191_v12, %v185_v11  ;;  %v194_v15 = vsel %vm188_vm2, %v191_v12, %v185_v11  ;;  %v195_v16 = vsel %vm1560_vm9, %v191_v12, %v185_v11  ;;  %s1178_s28 = sld [smem:[#allocation6 + $0x82]] }
  0x49   : > { %v201_v17 = vstv %s1154_s26  ;;  %v211_v18 = vstv %s772_s5  ;;  %vm1562_vm0 = vcmp.eq.s32.totalorder %v181_v5, 3  ;;  %s1188_s24 = sld [smem:[#allocation6 + $0x83]]  ;;  %vm1563_vm1 = vcmp.eq.s32.totalorder %v180_v4, 4 }
  0x4a   : > { %v202_v19 = vsel %vm1561_vm12, %v201_v17, %v192_v13  ;;  %v203_v20 = vsel %vm197_vm5, %v201_v17, %v193_v14  ;;  %v204_v21 = vsel %vm198_vm6, %v201_v17, %v194_v15  ;;  %v205_v22 = vsel %vm199_vm7, %v201_v17, %v195_v16  ;;  %s1206_s27 = sld [smem:[#allocation6 + $0x84]] }
  0x4b   : > { %v212_v23 = vsel %vm206_vm8, %v211_v18, %v202_v19  ;;  %v213_v24 = vsel %vm1562_vm0, %v211_v18, %v203_v20  ;;  %v214_v25 = vsel %vm208_vm10, %v211_v18, %v204_v21  ;;  %v215_v26 = vsel %vm209_vm11, %v211_v18, %v205_v22  ;;  %s1216_s29 = sld [smem:[#allocation6 + $0x85]] }
  0x4c   : > { %v221_v27 = vstv %s1165_s7  ;;  %v231_v28 = vstv %s774_s8  ;;  %v241_v30 = vstv %s775_s19  ;;  %vm1564_vm2 = vcmp.eq.s32.totalorder %v181_v5, 4  ;;  %s1222_s30 = sld [smem:[#allocation6 + $0x86]] }
  0x4d   : > { %v222_v31 = vsel %vm1563_vm1, %v221_v27, %v212_v23  ;;  %v223_v32 = vsel %vm1564_vm2, %v221_v27, %v213_v24  ;;  %vm1565_vm5 = vcmp.eq.s32.totalorder %v182_v6, 4  ;;  %v225_v34 = vsel %vm219_vm15, %v221_v27, %v215_v26  ;;  %s1228_s3 = sld [smem:[#allocation6 + $0x87]] }
  0x4e   : > { %v224_v33 = vsel %vm1565_vm5, %v221_v27, %v214_v25  ;;  %v1195_v35 = vsel %vm226_vm3, %v231_v28, %v222_v31  ;;  %v1198_v36 = vsel %vm227_vm4, %v231_v28, %v223_v32  ;;  %v1204_v38 = vsel %vm229_vm14, %v231_v28, %v225_v34  ;;  %s1234_s4 = sld [smem:[#allocation6 + $0x88]] }
  0x4f   : > { %v1201_v37 = vsel %vm228_vm13, %v231_v28, %v224_v33  ;;  %vm242_vm6 = vcmp.eq.s32.totalorder %v1157_v8, 8  ;;  %vm243_vm7 = vcmp.eq.s32.totalorder %v1160_v9, 8  ;;  %vm244_vm8 = vcmp.eq.s32.totalorder %v1163_v10, 8  ;;  %s1244_s16 = sld [smem:[#allocation6 + $0x89]] }
  0x50   : > { %vm245_vm3 = vcmp.eq.s32.totalorder %v1186_v29, 8  ;;  %v247_v39 = vstv %s1171_s25  ;;  %vm252_vm4 = vcmp.eq.s32.totalorder %v1157_v8, 16  ;;  %vm253_vm9 = vcmp.eq.s32.totalorder %v1160_v9, 16  ;;  %s1250_s17 = sld [smem:[#allocation6 + $0x8a]] }
  0x51   : > { %vm254_vm10 = vcmp.eq.s32.totalorder %v1163_v10, 16  ;;  %v248_v40 = vsel %vm242_vm6, %v247_v39, %v241_v30  ;;  %v249_v41 = vsel %vm243_vm7, %v247_v39, %v241_v30  ;;  %v250_v42 = vsel %vm244_vm8, %v247_v39, %v241_v30  ;;  %s1256_s23 = sld [smem:[#allocation6 + $0x8b]] }
  0x52   : > { %v251_v43 = vsel %vm245_vm3, %v247_v39, %v241_v30  ;;  %vm255_vm11 = vcmp.eq.s32.totalorder %v1186_v29, 16  ;;  %v257_v44 = vstv %s1178_s28  ;;  %vm262_vm12 = vcmp.eq.s32.totalorder %v1157_v8, 24  ;;  %s1262_s20 = sld [smem:[#allocation6 + $0x8c]] }
  0x53   : > { %vm263_vm13 = vcmp.eq.s32.totalorder %v1160_v9, 24  ;;  %v258_v45 = vsel %vm252_vm4, %v257_v44, %v248_v40  ;;  %v259_v46 = vsel %vm253_vm9, %v257_v44, %v249_v41  ;;  %v260_v47 = vsel %vm254_vm10, %v257_v44, %v250_v42  ;;  %s1272_s26 = sld [smem:[#allocation6 + $0x8d]] }
  0x54   : > { %v261_v48 = vsel %vm255_vm11, %v257_v44, %v251_v43  ;;  %vm264_vm14 = vcmp.eq.s32.totalorder %v1163_v10, 24  ;;  %vm265_vm15 = vcmp.eq.s32.totalorder %v1186_v29, 24  ;;  %v267_v49 = vstv %s1188_s24  ;;  %s1278_s5 = sld [smem:[#allocation6 + $0x8e]] }
  0x55   : > { %vm272_vm0 = vcmp.eq.s32.totalorder %v1157_v8, 32  ;;  %v268_v50 = vsel %vm262_vm12, %v267_v49, %v258_v45  ;;  %v269_v51 = vsel %vm263_vm13, %v267_v49, %v259_v46  ;;  %v270_v52 = vsel %vm264_vm14, %v267_v49, %v260_v47  ;;  %s1284_s7 = sld [smem:[#allocation6 + $0x8f]] }
  0x56   : > { %v271_v53 = vsel %vm265_vm15, %v267_v49, %v261_v48  ;;  %vm273_vm1 = vcmp.eq.s32.totalorder %v1160_v9, 32  ;;  %vm274_vm2 = vcmp.eq.s32.totalorder %v1163_v10, 32  ;;  %vm275_vm5 = vcmp.eq.s32.totalorder %v1186_v29, 32  ;;  %s1290_s8 = sld [smem:[#allocation6 + $0x90]] }
  0x57   : > { %v277_v54 = vstv %s1206_s27  ;;  %vm282_vm6 = vcmp.eq.s32.totalorder %v1157_v8, 40  ;;  %vm283_vm7 = vcmp.eq.s32.totalorder %v1160_v9, 40  ;;  %vm284_vm8 = vcmp.eq.s32.totalorder %v1163_v10, 40  ;;  %s1300_s19 = sld [smem:[#allocation6 + $0x91]] }
  0x58   : > { %v278_v55 = vsel %vm272_vm0, %v277_v54, %v268_v50  ;;  %v279_v56 = vsel %vm273_vm1, %v277_v54, %v269_v51  ;;  %v280_v57 = vsel %vm274_vm2, %v277_v54, %v270_v52  ;;  %v281_v58 = vsel %vm275_vm5, %v277_v54, %v271_v53  ;;  %s1306_s25 = sld [smem:[#allocation6 + $0x92]] }
  0x59   : > { %vm285_vm3 = vcmp.eq.s32.totalorder %v1186_v29, 40  ;;  %v287_v59 = vstv %s1216_s29  ;;  %vm292_vm4 = vcmp.eq.s32.totalorder %v1157_v8, 48  ;;  %vm293_vm9 = vcmp.eq.s32.totalorder %v1160_v9, 48  ;;  %s1312_s28 = sld [smem:[#allocation6 + $0x93]] }
  0x5a   : > { %vm294_vm10 = vcmp.eq.s32.totalorder %v1163_v10, 48  ;;  %v288_v60 = vsel %vm282_vm6, %v287_v59, %v278_v55  ;;  %v289_v61 = vsel %vm283_vm7, %v287_v59, %v279_v56  ;;  %v290_v62 = vsel %vm284_vm8, %v287_v59, %v280_v57  ;;  %s1318_s24 = sld [smem:[#allocation6 + $0x94]] }
  0x5b   : > { %v291_v63 = vsel %vm285_vm3, %v287_v59, %v281_v58  ;;  %vm295_vm11 = vcmp.eq.s32.totalorder %v1186_v29, 48  ;;  %v297_v4 = vstv %s1222_s30  ;;  %vm302_vm12 = vcmp.eq.s32.totalorder %v1157_v8, 56  ;;  %s1328_s27 = sld [smem:[#allocation6 + $0x95]] }
  0x5c   : > { %vm303_vm13 = vcmp.eq.s32.totalorder %v1160_v9, 56  ;;  %v298_v5 = vsel %vm292_vm4, %v297_v4, %v288_v60  ;;  %v299_v6 = vsel %vm293_vm9, %v297_v4, %v289_v61  ;;  %v300_v7 = vsel %vm294_vm10, %v297_v4, %v290_v62  ;;  %s1334_s29 = sld [smem:[#allocation6 + $0x96]] }
  0x5d   : > { %v301_v11 = vsel %vm295_vm11, %v297_v4, %v291_v63  ;;  %vm304_vm14 = vcmp.eq.s32.totalorder %v1163_v10, 56  ;;  %vm305_vm15 = vcmp.eq.s32.totalorder %v1186_v29, 56  ;;  %v307_v12 = vstv %s1228_s3  ;;  %s1340_s30 = sld [smem:[#allocation6 + $0x97]] }
  0x5e   : > { %vm312_vm0 = vcmp.eq.s32.totalorder %v1157_v8, 64  ;;  %v308_v13 = vsel %vm302_vm12, %v307_v12, %v298_v5  ;;  %v309_v14 = vsel %vm303_vm13, %v307_v12, %v299_v6  ;;  %v310_v15 = vsel %vm304_vm14, %v307_v12, %v300_v7  ;;  %s1346_s3 = sld [smem:[#allocation6 + $0x100]] }
  0x5f   : > { %v311_v16 = vsel %vm305_vm15, %v307_v12, %v301_v11  ;;  %vm313_vm1 = vcmp.eq.s32.totalorder %v1160_v9, 64  ;;  %vm314_vm2 = vcmp.eq.s32.totalorder %v1163_v10, 64  ;;  %vm315_vm5 = vcmp.eq.s32.totalorder %v1186_v29, 64 }
  0x60   : > { %v317_v17 = vstv %s1234_s4  ;;  %vm322_vm6 = vcmp.eq.s32.totalorder %v1157_v8, 72  ;;  %vm323_vm7 = vcmp.eq.s32.totalorder %v1160_v9, 72  ;;  %vm324_vm8 = vcmp.eq.s32.totalorder %v1163_v10, 72  ;;  %s1352_s4 = sld [smem:[#allocation6 + $0x101]] }
  0x61   : > { %v318_v18 = vsel %vm312_vm0, %v317_v17, %v308_v13  ;;  %v319_v19 = vsel %vm313_vm1, %v317_v17, %v309_v14  ;;  %v320_v20 = vsel %vm314_vm2, %v317_v17, %v310_v15  ;;  %v321_v21 = vsel %vm315_vm5, %v317_v17, %v311_v16 }
  0x62   : > { %vm325_vm3 = vcmp.eq.s32.totalorder %v1186_v29, 72  ;;  %v327_v22 = vstv %s1244_s16  ;;  %vm332_vm4 = vcmp.eq.s32.totalorder %v1157_v8, 80  ;;  %vm333_vm9 = vcmp.eq.s32.totalorder %v1160_v9, 80  ;;  %s1358_s16 = sld [smem:[#allocation6 + $0x102]] }
  0x63   : > { %vm334_vm10 = vcmp.eq.s32.totalorder %v1163_v10, 80  ;;  %v328_v23 = vsel %vm322_vm6, %v327_v22, %v318_v18  ;;  %v329_v24 = vsel %vm323_vm7, %v327_v22, %v319_v19  ;;  %v330_v25 = vsel %vm324_vm8, %v327_v22, %v320_v20 }
  0x64   : > { %v331_v26 = vsel %vm325_vm3, %v327_v22, %v321_v21  ;;  %vm335_vm11 = vcmp.eq.s32.totalorder %v1186_v29, 80  ;;  %v337_v27 = vstv %s1250_s17  ;;  %vm342_vm12 = vcmp.eq.s32.totalorder %v1157_v8, 88  ;;  %s1370_s17 = sld [smem:[#allocation6 + $0x103]] }
  0x65   : > { %vm343_vm13 = vcmp.eq.s32.totalorder %v1160_v9, 88  ;;  %v338_v28 = vsel %vm332_vm4, %v337_v27, %v328_v23  ;;  %v339_v30 = vsel %vm333_vm9, %v337_v27, %v329_v24  ;;  %v340_v31 = vsel %vm334_vm10, %v337_v27, %v330_v25 }
  0x66   : > { %v341_v32 = vsel %vm335_vm11, %v337_v27, %v331_v26  ;;  %vm344_vm14 = vcmp.eq.s32.totalorder %v1163_v10, 88  ;;  %vm345_vm15 = vcmp.eq.s32.totalorder %v1186_v29, 88  ;;  %v347_v33 = vstv %s1256_s23  ;;  %s1394_s23 = sld [smem:[#allocation6 + $0x104]] }
  0x67   : > { %vm352_vm0 = vcmp.eq.s32.totalorder %v1157_v8, 96  ;;  %v348_v34 = vsel %vm342_vm12, %v347_v33, %v338_v28  ;;  %v349_v39 = vsel %vm343_vm13, %v347_v33, %v339_v30  ;;  %v350_v40 = vsel %vm344_vm14, %v347_v33, %v340_v31 }
  0x68   : > { %v351_v41 = vsel %vm345_vm15, %v347_v33, %v341_v32  ;;  %vm353_vm1 = vcmp.eq.s32.totalorder %v1160_v9, 96  ;;  %vm354_vm2 = vcmp.eq.s32.totalorder %v1163_v10, 96  ;;  %vm355_vm5 = vcmp.eq.s32.totalorder %v1186_v29, 96 }
  0x69   : > { %v357_v42 = vstv %s1262_s20  ;;  %vm362_vm6 = vcmp.eq.s32.totalorder %v1157_v8, 104  ;;  %vm363_vm7 = vcmp.eq.s32.totalorder %v1160_v9, 104  ;;  %vm364_vm8 = vcmp.eq.s32.totalorder %v1163_v10, 104  ;;  %s1404_s20 = sld [smem:[#allocation6 + $0x105]] }
  0x6a   : > { %v358_v43 = vsel %vm352_vm0, %v357_v42, %v348_v34  ;;  %v359_v44 = vsel %vm353_vm1, %v357_v42, %v349_v39  ;;  %v360_v45 = vsel %vm354_vm2, %v357_v42, %v350_v40  ;;  %v361_v46 = vsel %vm355_vm5, %v357_v42, %v351_v41 }
  0x6b   : > { %vm365_vm3 = vcmp.eq.s32.totalorder %v1186_v29, 104  ;;  %v367_v47 = vstv %s1272_s26  ;;  %vm372_vm4 = vcmp.eq.s32.totalorder %v1157_v8, 112  ;;  %vm373_vm9 = vcmp.eq.s32.totalorder %v1160_v9, 112  ;;  %s1410_s26 = sld [smem:[#allocation6 + $0x106]] }
  0x6c   : > { %vm374_vm10 = vcmp.eq.s32.totalorder %v1163_v10, 112  ;;  %v368_v48 = vsel %vm362_vm6, %v367_v47, %v358_v43  ;;  %v369_v49 = vsel %vm363_vm7, %v367_v47, %v359_v44  ;;  %v370_v50 = vsel %vm364_vm8, %v367_v47, %v360_v45 }
  0x6d   : > { %v371_v51 = vsel %vm365_vm3, %v367_v47, %v361_v46  ;;  %vm375_vm11 = vcmp.eq.s32.totalorder %v1186_v29, 112  ;;  %v377_v52 = vstv %s1278_s5  ;;  %vm382_vm12 = vcmp.eq.s32.totalorder %v1157_v8, 120  ;;  %s1416_s5 = sld [smem:[#allocation6 + $0x107]] }
  0x6e   : > { %vm383_vm13 = vcmp.eq.s32.totalorder %v1160_v9, 120  ;;  %v378_v53 = vsel %vm372_vm4, %v377_v52, %v368_v48  ;;  %v379_v54 = vsel %vm373_vm9, %v377_v52, %v369_v49  ;;  %v380_v55 = vsel %vm374_vm10, %v377_v52, %v370_v50 }
  0x6f   : > { %v381_v56 = vsel %vm375_vm11, %v377_v52, %v371_v51  ;;  %vm384_vm14 = vcmp.eq.s32.totalorder %v1163_v10, 120  ;;  %vm385_vm15 = vcmp.eq.s32.totalorder %v1186_v29, 120  ;;  %v387_v57 = vstv %s1284_s7  ;;  %s1422_s7 = sld [smem:[#allocation6 + $0x108]] }
  0x70   : > { %vm392_vm0 = vcmp.eq.s32.totalorder %v1157_v8, 128  ;;  %v388_v58 = vsel %vm382_vm12, %v387_v57, %v378_v53  ;;  %v389_v59 = vsel %vm383_vm13, %v387_v57, %v379_v54  ;;  %v390_v60 = vsel %vm384_vm14, %v387_v57, %v380_v55 }
  0x71   : > { %v391_v61 = vsel %vm385_vm15, %v387_v57, %v381_v56  ;;  %vm393_vm1 = vcmp.eq.s32.totalorder %v1160_v9, 128  ;;  %vm394_vm2 = vcmp.eq.s32.totalorder %v1163_v10, 128  ;;  %vm395_vm5 = vcmp.eq.s32.totalorder %v1186_v29, 128 }
  0x72   : > { %v397_v62 = vstv %s1290_s8  ;;  %vm402_vm6 = vcmp.eq.s32.totalorder %v1157_v8, 136  ;;  %vm403_vm7 = vcmp.eq.s32.totalorder %v1160_v9, 136  ;;  %vm404_vm8 = vcmp.eq.s32.totalorder %v1163_v10, 136  ;;  %s1432_s8 = sld [smem:[#allocation6 + $0x109]] }
  0x73   : > { %v398_v63 = vsel %vm392_vm0, %v397_v62, %v388_v58  ;;  %v399_v4 = vsel %vm393_vm1, %v397_v62, %v389_v59  ;;  %v400_v5 = vsel %vm394_vm2, %v397_v62, %v390_v60  ;;  %v401_v6 = vsel %vm395_vm5, %v397_v62, %v391_v61 }
  0x74   : > { %vm405_vm3 = vcmp.eq.s32.totalorder %v1186_v29, 136  ;;  %v407_v7 = vstv %s1300_s19  ;;  %vm412_vm4 = vcmp.eq.s32.totalorder %v1157_v8, 144  ;;  %vm413_vm9 = vcmp.eq.s32.totalorder %v1160_v9, 144  ;;  %s1438_s19 = sld [smem:[#allocation6 + $0x10a]] }
  0x75   : > { %vm414_vm10 = vcmp.eq.s32.totalorder %v1163_v10, 144  ;;  %v408_v11 = vsel %vm402_vm6, %v407_v7, %v398_v63  ;;  %v409_v12 = vsel %vm403_vm7, %v407_v7, %v399_v4  ;;  %v410_v13 = vsel %vm404_vm8, %v407_v7, %v400_v5 }
  0x76   : > { %v411_v14 = vsel %vm405_vm3, %v407_v7, %v401_v6  ;;  %vm415_vm11 = vcmp.eq.s32.totalorder %v1186_v29, 144  ;;  %v417_v15 = vstv %s1306_s25  ;;  %vm422_vm12 = vcmp.eq.s32.totalorder %v1157_v8, 152  ;;  %s1444_s25 = sld [smem:[#allocation6 + $0x10b]] }
  0x77   : > { %vm423_vm13 = vcmp.eq.s32.totalorder %v1160_v9, 152  ;;  %v418_v16 = vsel %vm412_vm4, %v417_v15, %v408_v11  ;;  %v419_v17 = vsel %vm413_vm9, %v417_v15, %v409_v12  ;;  %v420_v18 = vsel %vm414_vm10, %v417_v15, %v410_v13 }
  0x78   : > { %v421_v19 = vsel %vm415_vm11, %v417_v15, %v411_v14  ;;  %vm424_vm14 = vcmp.eq.s32.totalorder %v1163_v10, 152  ;;  %vm425_vm15 = vcmp.eq.s32.totalorder %v1186_v29, 152  ;;  %v427_v20 = vstv %s1312_s28  ;;  %s1450_s28 = sld [smem:[#allocation6 + $0x180]] }
  0x79   : > { %vm432_vm0 = vcmp.eq.s32.totalorder %v1157_v8, 160  ;;  %v428_v21 = vsel %vm422_vm12, %v427_v20, %v418_v16  ;;  %v429_v22 = vsel %vm423_vm13, %v427_v20, %v419_v17  ;;  %v430_v23 = vsel %vm424_vm14, %v427_v20, %v420_v18 }
  0x7a   : > { %v431_v24 = vsel %vm425_vm15, %v427_v20, %v421_v19  ;;  %vm433_vm1 = vcmp.eq.s32.totalorder %v1160_v9, 160  ;;  %vm434_vm2 = vcmp.eq.s32.totalorder %v1163_v10, 160  ;;  %vm435_vm5 = vcmp.eq.s32.totalorder %v1186_v29, 160 }
  0x7b   : > { %v437_v25 = vstv %s1318_s24  ;;  %vm442_vm6 = vcmp.eq.s32.totalorder %v1157_v8, 168  ;;  %vm443_vm7 = vcmp.eq.s32.totalorder %v1160_v9, 168  ;;  %vm444_vm8 = vcmp.eq.s32.totalorder %v1163_v10, 168  ;;  %s1456_s24 = sld [smem:[#allocation6 + $0x181]] }
  0x7c   : > { %v438_v26 = vsel %vm432_vm0, %v437_v25, %v428_v21  ;;  %v439_v27 = vsel %vm433_vm1, %v437_v25, %v429_v22  ;;  %v440_v28 = vsel %vm434_vm2, %v437_v25, %v430_v23  ;;  %v441_v30 = vsel %vm435_vm5, %v437_v25, %v431_v24 }
  0x7d   : > { %vm445_vm3 = vcmp.eq.s32.totalorder %v1186_v29, 168  ;;  %v447_v31 = vstv %s1328_s27  ;;  %vm452_vm4 = vcmp.eq.s32.totalorder %v1157_v8, 176  ;;  %vm453_vm9 = vcmp.eq.s32.totalorder %v1160_v9, 176  ;;  %s1462_s27 = sld [smem:[#allocation6 + $0x182]] }
  0x7e   : > { %vm454_vm10 = vcmp.eq.s32.totalorder %v1163_v10, 176  ;;  %v448_v32 = vsel %vm442_vm6, %v447_v31, %v438_v26  ;;  %v449_v33 = vsel %vm443_vm7, %v447_v31, %v439_v27  ;;  %v450_v34 = vsel %vm444_vm8, %v447_v31, %v440_v28 }
  0x7f   : > { %v451_v39 = vsel %vm445_vm3, %v447_v31, %v441_v30  ;;  %vm455_vm11 = vcmp.eq.s32.totalorder %v1186_v29, 176  ;;  %v457_v40 = vstv %s1334_s29  ;;  %vm462_vm12 = vcmp.eq.s32.totalorder %v1157_v8, 184  ;;  %s1472_s29 = sld [smem:[#allocation6 + $0x183]] }
  0x80   : > { %vm463_vm13 = vcmp.eq.s32.totalorder %v1160_v9, 184  ;;  %v458_v41 = vsel %vm452_vm4, %v457_v40, %v448_v32  ;;  %v459_v42 = vsel %vm453_vm9, %v457_v40, %v449_v33  ;;  %v460_v43 = vsel %vm454_vm10, %v457_v40, %v450_v34 }
  0x81   : > { %v461_v44 = vsel %vm455_vm11, %v457_v40, %v451_v39  ;;  %vm464_vm14 = vcmp.eq.s32.totalorder %v1163_v10, 184  ;;  %vm465_vm15 = vcmp.eq.s32.totalorder %v1186_v29, 184  ;;  %v467_v45 = vstv %s1340_s30  ;;  %s1482_s30 = sld [smem:[#allocation6 + $0x184]] }
  0x82   : > { %v1368_v46 = vand.u32 3840, %v1142_v0  ;;  %v468_v47 = vsel %vm462_vm12, %v467_v45, %v458_v41  ;;  %v469_v48 = vsel %vm463_vm13, %v467_v45, %v459_v42  ;;  %v470_v8 = vsel %vm464_vm14, %v467_v45, %v460_v43 }
  0x83   : > { %v471_v49 = vsel %vm465_vm15, %v467_v45, %v461_v44  ;;  %v1373_v9 = vmul.f32 %v468_v47, %v1195_v35  ;;  %v1376_v10 = vmul.f32 %v469_v48, %v1198_v36  ;;  %v1379_v29 = vmul.f32 %v470_v8, %v1201_v37 }
  0x84   : > { %v1382_v50 = vmul.f32 %v471_v49, %v1204_v38  ;;  %v1385_v51 = vand.u32 3840, %v1144_v1  ;;  %v1388_v52 = vand.u32 3840, %v1146_v2  ;;  %v1391_v53 = vand.u32 3840, %v1148_v3 }
  0x85   : > { %v481_v35 = vstv %s1346_s3  ;;  %vm482_vm0 = vcmp.eq.s32.totalorder %v1368_v46, 256  ;;  %v487_v36 = vstv %s1352_s4  ;;  %vm492_vm1 = vcmp.eq.s32.totalorder %v1368_v46, 512  ;;  %s1486_s3 = sld [smem:[#allocation6 + $0x185]]  ;;  %s823_s4 = sshll.u32 %s1037_s13, 9 }
  0x86   : > { %v497_v37 = vstv %s1358_s16  ;;  %vm483_vm2 = vcmp.eq.s32.totalorder %v1385_v51, 256  ;;  %vm484_vm5 = vcmp.eq.s32.totalorder %v1388_v52, 256  ;;  %vm485_vm6 = vcmp.eq.s32.totalorder %v1391_v53, 256  ;;  %s173_s16 = scalar_lea.vmem [#allocation7], %s767_s14  ;;  %s661_s13 = scalar_lea.sflag [#allocation4], %s1128_s6 }
  0x87   : > { %v488_v38 = vsel %vm482_vm0, %v487_v36, %v481_v35  ;;  %v489_v54 = vsel %vm483_vm2, %v487_v36, %v481_v35  ;;  %v490_v55 = vsel %vm484_vm5, %v487_v36, %v481_v35  ;;  %v491_v56 = vsel %vm485_vm6, %v487_v36, %v481_v35 }
  0x88   : > { %vm493_vm7 = vcmp.eq.s32.totalorder %v1385_v51, 512  ;;  %vm494_vm8 = vcmp.eq.s32.totalorder %v1388_v52, 512  ;;  %vm495_vm3 = vcmp.eq.s32.totalorder %v1391_v53, 512  ;;  %v498_v57 = vsel %vm492_vm1, %v497_v37, %v488_v38 }
  0x89   : > { %v499_v58 = vsel %vm493_vm7, %v497_v37, %v489_v54  ;;  %v500_v59 = vsel %vm494_vm8, %v497_v37, %v490_v55  ;;  %v501_v60 = vsel %vm495_vm3, %v497_v37, %v491_v56  ;;  %vm502_vm4 = vcmp.eq.s32.totalorder %v1368_v46, 768 }
  0x8a   : > { %vm503_vm9 = vcmp.eq.s32.totalorder %v1385_v51, 768  ;;  %vm504_vm10 = vcmp.eq.s32.totalorder %v1388_v52, 768  ;;  %vm505_vm11 = vcmp.eq.s32.totalorder %v1391_v53, 768  ;;  %v507_v61 = vstv %s1370_s17  ;;  %s674_s17 = sshll.u32 %s173_s16, 4  ;;  %s1499_s17 = int_to_ptr.vmem [resolvable:$true] %s674_s17 }
  0x8b   : > { %vm512_vm12 = vcmp.eq.s32.totalorder %v1368_v46, 1024  ;;  %v508_v62 = vsel %vm502_vm4, %v507_v61, %v498_v57  ;;  %v509_v63 = vsel %vm503_vm9, %v507_v61, %v499_v58  ;;  %v510_v4 = vsel %vm504_vm10, %v507_v61, %v500_v59  ;;  %s924_s14 = scalar_lea.vmem %s1499_s17, 512 }
  0x8c   : > { %v511_v5 = vsel %vm505_vm11, %v507_v61, %v501_v60  ;;  %vm513_vm13 = vcmp.eq.s32.totalorder %v1385_v51, 1024  ;;  %vm514_vm14 = vcmp.eq.s32.totalorder %v1388_v52, 1024  ;;  %vm515_vm15 = vcmp.eq.s32.totalorder %v1391_v53, 1024  ;;  %p925_p1 = scmp.ne.s32.totalorder %s1499_s17, %s924_s14 }
  0x8d   : > { %v517_v6 = vstv %s1394_s23  ;;  %vm522_vm0 = vcmp.eq.s32.totalorder %v1368_v46, 1280  ;;  %vm523_vm1 = vcmp.eq.s32.totalorder %v1385_v51, 1280  ;;  %vm524_vm2 = vcmp.eq.s32.totalorder %v1388_v52, 1280 }
  0x8e   : > { %v518_v7 = vsel %vm512_vm12, %v517_v6, %v508_v62  ;;  %v519_v11 = vsel %vm513_vm13, %v517_v6, %v509_v63  ;;  %v520_v12 = vsel %vm514_vm14, %v517_v6, %v510_v4  ;;  %v521_v13 = vsel %vm515_vm15, %v517_v6, %v511_v5  ;;  %p926_p6 = pnand %p925_p1, %p1566_p7 }
  0x8f   : > { %vm525_vm5 = vcmp.eq.s32.totalorder %v1391_v53, 1280  ;;  %v527_v14 = vstv %s1404_s20  ;;  %vm532_vm6 = vcmp.eq.s32.totalorder %v1368_v46, 1536  ;;  %vm533_vm7 = vcmp.eq.s32.totalorder %v1385_v51, 1536 }
  0x90   : > { %vm534_vm8 = vcmp.eq.s32.totalorder %v1388_v52, 1536  ;;  %v528_v15 = vsel %vm522_vm0, %v527_v14, %v518_v7  ;;  %v529_v16 = vsel %vm523_vm1, %v527_v14, %v519_v11  ;;  %v530_v17 = vsel %vm524_vm2, %v527_v14, %v520_v12  ;;  %p927_p8 = pneg %p926_p6 }
  0x91   : > { %v531_v18 = vsel %vm525_vm5, %v527_v14, %v521_v13  ;;  %vm535_vm3 = vcmp.eq.s32.totalorder %v1391_v53, 1536  ;;  %v537_v19 = vstv %s1410_s26  ;;  %vm542_vm4 = vcmp.eq.s32.totalorder %v1368_v46, 1792  ;;  %s1497_s26 = scalar_lea.hbm %s1544_s2, %s823_s4 }
  0x92   : > { %vm543_vm9 = vcmp.eq.s32.totalorder %v1385_v51, 1792  ;;  %v538_v20 = vsel %vm532_vm6, %v537_v19, %v528_v15  ;;  %v539_v21 = vsel %vm533_vm7, %v537_v19, %v529_v16  ;;  %v540_v22 = vsel %vm534_vm8, %v537_v19, %v530_v17 }
  0x93   : > { %v541_v23 = vsel %vm535_vm3, %v537_v19, %v531_v18  ;;  %vm544_vm10 = vcmp.eq.s32.totalorder %v1388_v52, 1792  ;;  %vm545_vm11 = vcmp.eq.s32.totalorder %v1391_v53, 1792  ;;  %v547_v24 = vstv %s1416_s5  ;;  %s998_s5 = smov [#allocation7]  }
  0x94   : > { %vm552_vm12 = vcmp.eq.s32.totalorder %v1368_v46, 2048  ;;  %v548_v25 = vsel %vm542_vm4, %v547_v24, %v538_v20  ;;  %v549_v26 = vsel %vm543_vm9, %v547_v24, %v539_v21  ;;  %v550_v27 = vsel %vm544_vm10, %v547_v24, %v540_v22 }
  0x95   : > { %v551_v28 = vsel %vm545_vm11, %v547_v24, %v541_v23  ;;  %vm553_vm13 = vcmp.eq.s32.totalorder %v1385_v51, 2048  ;;  %vm554_vm14 = vcmp.eq.s32.totalorder %v1388_v52, 2048  ;;  %vm555_vm15 = vcmp.eq.s32.totalorder %v1391_v53, 2048 }
  0x96   : > { %v557_v30 = vstv %s1422_s7  ;;  %vm562_vm0 = vcmp.eq.s32.totalorder %v1368_v46, 2304  ;;  %vm563_vm1 = vcmp.eq.s32.totalorder %v1385_v51, 2304  ;;  %vm564_vm2 = vcmp.eq.s32.totalorder %v1388_v52, 2304  ;;  %s928_s7 = sshll.u32 %s998_s5, 4  ;;  %s929_s7 = int_to_ptr.vmem [resolvable:$false] %s928_s7 }
  0x97   : > { %v558_v31 = vsel %vm552_vm12, %v557_v30, %v548_v25  ;;  %v559_v32 = vsel %vm553_vm13, %v557_v30, %v549_v26  ;;  %v560_v33 = vsel %vm554_vm14, %v557_v30, %v550_v27  ;;  %v561_v34 = vsel %vm555_vm15, %v557_v30, %v551_v28  ;;  %p931_p9 = scmp.lt.s32.totalorder %s1499_s17, %s929_s7 }
  0x98   : > { %vm565_vm5 = vcmp.eq.s32.totalorder %v1391_v53, 2304  ;;  %v567_v39 = vstv %s1432_s8  ;;  %vm572_vm6 = vcmp.eq.s32.totalorder %v1368_v46, 2560  ;;  %vm573_vm7 = vcmp.eq.s32.totalorder %v1385_v51, 2560  ;;  %s930_s8 = scalar_lea.vmem %s929_s7, 1024 }
  0x99   : > { %vm574_vm8 = vcmp.eq.s32.totalorder %v1388_v52, 2560  ;;  %v568_v40 = vsel %vm562_vm0, %v567_v39, %v558_v31  ;;  %v569_v41 = vsel %vm563_vm1, %v567_v39, %v559_v32  ;;  %v570_v42 = vsel %vm564_vm2, %v567_v39, %v560_v33  ;;  %p932_p10 = scmp.lt.s32.totalorder %s930_s8, %s924_s14 }
  0x9a   : > { %v571_v43 = vsel %vm565_vm5, %v567_v39, %v561_v34  ;;  %vm575_vm3 = vcmp.eq.s32.totalorder %v1391_v53, 2560  ;;  %v577_v44 = vstv %s1438_s19  ;;  %vm582_vm4 = vcmp.eq.s32.totalorder %v1368_v46, 2816 }
  0x9b   : > { %vm583_vm9 = vcmp.eq.s32.totalorder %v1385_v51, 2816  ;;  %v578_v45 = vsel %vm572_vm6, %v577_v44, %v568_v40  ;;  %v579_v47 = vsel %vm573_vm7, %v577_v44, %v569_v41  ;;  %v580_v48 = vsel %vm574_vm8, %v577_v44, %v570_v42  ;;  %p933_p2 = por %p932_p10, %p931_p9 }
  0x9c   : > { %v581_v8 = vsel %vm575_vm3, %v577_v44, %v571_v43  ;;  %vm584_vm10 = vcmp.eq.s32.totalorder %v1388_v52, 2816  ;;  %vm585_vm11 = vcmp.eq.s32.totalorder %v1391_v53, 2816  ;;  %v587_v49 = vstv %s1444_s25 }
  0x9d   : > { %v596_v35 = vshra.s32 %v1142_v0, 12  ;;  %v588_v36 = vsel %vm582_vm4, %v587_v49, %v578_v45  ;;  %v589_v37 = vsel %vm583_vm9, %v587_v49, %v579_v47  ;;  %v590_v38 = vsel %vm584_vm10, %v587_v49, %v580_v48  ;;  %p934_p0 = pnand %p933_p2, %p927_p8 }
  0x9e   : > { %v591_v46 = vsel %vm585_vm11, %v587_v49, %v581_v8  ;;  %v592_v51 = vmul.f32 %v588_v36, %v1373_v9  ;;  %v593_v54 = vmul.f32 %v589_v37, %v1376_v10  ;;  %v594_v52 = vmul.f32 %v590_v38, %v1379_v29 }
  0x9f   : > { %v595_v55 = vmul.f32 %v591_v46, %v1382_v50  ;;  %v597_v53 = vshra.s32 %v1144_v1, 12  ;;  %v598_v0 = vshra.s32 %v1146_v2, 12  ;;  %v599_v56 = vshra.s32 %v1148_v3, 12 }
  0xa0   : > { %v601_v57 = vstv %s1450_s28  ;;  %vm602_vm12 = vcmp.eq.s32.totalorder %v596_v35, 1  ;;  %v607_v58 = vstv %s1456_s24  ;;  %vm612_vm13 = vcmp.eq.s32.totalorder %v596_v35, 2 }
  0xa1   : > { %v617_v59 = vstv %s1462_s27  ;;  %vm603_vm14 = vcmp.eq.s32.totalorder %v597_v53, 1  ;;  %vm604_vm15 = vcmp.eq.s32.totalorder %v598_v0, 1  ;;  %vm605_vm0 = vcmp.eq.s32.totalorder %v599_v56, 1 }
  0xa2   : > { %v608_v9 = vsel %vm602_vm12, %v607_v58, %v601_v57  ;;  %v609_v10 = vsel %vm603_vm14, %v607_v58, %v601_v57  ;;  %v610_v29 = vsel %vm604_vm15, %v607_v58, %v601_v57  ;;  %v611_v50 = vsel %vm605_vm0, %v607_v58, %v601_v57 }
  0xa3   : > { %vm613_vm1 = vcmp.eq.s32.totalorder %v597_v53, 2  ;;  %vm614_vm2 = vcmp.eq.s32.totalorder %v598_v0, 2  ;;  %vm615_vm5 = vcmp.eq.s32.totalorder %v599_v56, 2  ;;  %v618_v1 = vsel %vm612_vm13, %v617_v59, %v608_v9 }
  0xa4   : > { %v619_v2 = vsel %vm613_vm1, %v617_v59, %v609_v10  ;;  %v620_v3 = vsel %vm614_vm2, %v617_v59, %v610_v29  ;;  %v621_v60 = vsel %vm615_vm5, %v617_v59, %v611_v50  ;;  %vm622_vm6 = vcmp.eq.s32.totalorder %v596_v35, 3 }
  0xa5   : > { %vm623_vm7 = vcmp.eq.s32.totalorder %v597_v53, 3  ;;  %vm624_vm8 = vcmp.eq.s32.totalorder %v598_v0, 3  ;;  %vm625_vm3 = vcmp.eq.s32.totalorder %v599_v56, 3  ;;  %v627_v61 = vstv %s1472_s29 }
  0xa6   : > { %vm632_vm4 = vcmp.eq.s32.totalorder %v596_v35, 4  ;;  %v628_v62 = vsel %vm622_vm6, %v627_v61, %v618_v1  ;;  %v629_v63 = vsel %vm623_vm7, %v627_v61, %v619_v2  ;;  %v630_v4 = vsel %vm624_vm8, %v627_v61, %v620_v3 }
  0xa7   : > { %v631_v5 = vsel %vm625_vm3, %v627_v61, %v621_v60  ;;  %vm633_vm9 = vcmp.eq.s32.totalorder %v597_v53, 4  ;;  %vm634_vm10 = vcmp.eq.s32.totalorder %v598_v0, 4  ;;  %vm635_vm11 = vcmp.eq.s32.totalorder %v599_v56, 4 }
  0xa8   : > { %v637_v6 = vstv %s1482_s30  ;;  %vm642_vm12 = vcmp.eq.s32.totalorder %v596_v35, 5  ;;  %vm643_vm13 = vcmp.eq.s32.totalorder %v597_v53, 5  ;;  %vm644_vm14 = vcmp.eq.s32.totalorder %v598_v0, 5 }
  0xa9   : > { %v638_v7 = vsel %vm632_vm4, %v637_v6, %v628_v62  ;;  %v639_v11 = vsel %vm633_vm9, %v637_v6, %v629_v63  ;;  %v640_v12 = vsel %vm634_vm10, %v637_v6, %v630_v4  ;;  %v641_v13 = vsel %vm635_vm11, %v637_v6, %v631_v5 }
  0xaa   : > { %vm645_vm15 = vcmp.eq.s32.totalorder %v599_v56, 5  ;;  %v647_v14 = vstv %s1486_s3 }
  0xab   : > { %v648_v15 = vsel %vm642_vm12, %v647_v14, %v638_v7  ;;  %v649_v16 = vsel %vm643_vm13, %v647_v14, %v639_v11  ;;  %v650_v17 = vsel %vm644_vm14, %v647_v14, %v640_v12  ;;  %v651_v18 = vsel %vm645_vm15, %v647_v14, %v641_v13 }
  0xac   : > { %v652_v19 = vmul.f32 %v648_v15, %v592_v51  ;;  %v653_v20 = vmul.f32 %v649_v16, %v593_v54  ;;  %v654_v21 = vmul.f32 %v650_v17, %v594_v52  ;;  %v655_v22 = vmul.f32 %v651_v18, %v595_v55 }
  0xae   : > { %656 = vst [vmem:[%s173_s16] sm:$0xff] %v652_v19  ;;  %657 = vst [vmem:[%s173_s16 + $0x8] sm:$0xff] %v653_v20 }
  0xaf   : > { %658 = vst [vmem:[%s173_s16 + $0x10] sm:$0xff] %v654_v21  ;;  %659 = vst [vmem:[%s173_s16 + $0x18] sm:$0xff] %v655_v22 }
  0xb0   : > { %937 = shalt.err (!%p934_p0)
}
  0xb1   : > { %s938_s19 = scalar_lea.hbm %s1497_s26, 512  ;;  %s942_s24 = scalar_lea.hbm %s1544_s2, 1024 }
  0xb2   : > { %p939_p3 = scmp.ne.s32.totalorder %s1497_s26, %s938_s19  ;;  %p943_p11 = scmp.lt.s32.totalorder %s1497_s26, %s1544_s2 }
  0xb3   : > { %p944_p12 = scmp.lt.s32.totalorder %s942_s24, %s938_s19 }
  0xb4   : > { %p940_p5 = pnand %p939_p3, %p1566_p7 }
  0xb5   : > { %p945_p13 = por %p944_p12, %p943_p11 }
  0xb6   : > { %p941_p4 = pneg %p940_p5 }
  0xb8   : > { %p946_p1 = pnand %p945_p13, %p941_p4 }
  0xba   : > { %949 = shalt.err (!%p946_p1)
}
  0xbb   : > { %s999_s30 = smov 128   ;;  %s1000_s3 = smov 8  }
  0xbc   : > { %830 = dma.vmem_to_hbm [thread:$0]  (%p1566_p7), %s1499_s17, 512, %s1497_s26, %s661_s13, %s999_s30, %s999_s30, %s1000_s3  }
  0xbd PF: > { %s689_s4 = sand.u32 1, %s980_s9   ;;  %p1567_p6 = scmp.ne.s32.totalorder %s1552_s22, 0 }
  0xbe   : > { %p1568_p8 = scmp.ge.s32.totalorder %s992_s12, 2  ;;  %s690_s16 = scalar_lea.sflag [#allocation4], %s689_s4 }
  0xc0   : > { %p841_p9 = pnand %p1568_p8, %p1567_p6 }
  0xc2   : > { %p842_p10 = pneg %p841_p9 }
  0xc4   : > { %975 = dma.done.wait (%p842_p10), %s690_s16, 512  }
  0xc5   : > { %977 = vsyncadd (%p842_p10), %s690_s16, 4294966784  ;;  %p16_p2 = scmp.ge.s32.totalorder %s1041_s15, 4   ;;  %s1569_s9 = smov %s984_s10 }
  0xc6   : > { %s1570_s10 = smov %s988_s11  ;;  %s1571_s11 = smov %s1053_s18 }
  0xc7   : > { %s1572_s12 = smov %s1041_s15  ;;  %18 = sbr.rel (!%p16_p2) target bundleno = 6 (0x6), region = 78 }
  0xcc   :  { %695 = vsyncpa [#allocation3], 1 }
  0xcd   :  { %697 = vsyncpa [#allocation3 + $0x1], 1 }
  0xce   :  { %698 = vsyncpa [#allocation4], 1 }
  0xcf   :  { %700 = vsyncpa [#allocation4 + $0x1], 1 }
  0xd0   :  { %701 = vsyncpa [#allocation5], 1 }
  0xd1   :  { %703 = vsyncpa [#allocation5 + $0x1], 1 }

</bundles_post_ra>
